<compile_context>
chip_gen: v7x
topology: tpu7x:2x2x1
jax: 0.10.0
libtpu: 0.0.40
codegen_flags: <defaults>
</compile_context>

<pallas_src>
import functools

import jax
import jax.numpy as jnp
from jax.experimental import pallas as pl
from jax.experimental.pallas import tpu as pltpu


def _round_up(n, m):
    return ((n + m - 1) // m) * m


def _pad2d(a, rows, cols):
    """Zero-pad a 2-D array up to (rows, cols)."""
    r, c = a.shape
    return jnp.pad(a, ((0, rows - r), (0, cols - c)))


def _dm_encoder_kernel(x_ref, w1_ref, b1_ref, w2_ref, b2_ref, w3_ref, b3_ref,
                       o_ref, xp_ref, *, n_real_features):
    """Fused 3-layer MLP: bf16 MXU matmuls (f32 acc), f32 bias+ReLU on the VPU."""
    f = n_real_features
    fp = xp_ref.shape[1]

    # Stage the raw f32 input tile into a K-padded f32 scratch (masked lane
    # stores).  Pad columns are re-zeroed every step so the kernel is correct
    # even when the "parallel" batch axis is sharded across TensorCores.
    xp_ref[:, :f] = x_ref[...]
    if f < fp:
        xp_ref[:, f:] = jnp.zeros((xp_ref.shape[0], fp - f), xp_ref.dtype)
    x = xp_ref[...].astype(jnp.bfloat16)

    h1 = jnp.dot(x, w1_ref[...], preferred_element_type=jnp.float32)
    h1 = jnp.maximum(h1 + b1_ref[...], 0.0).astype(jnp.bfloat16)

    h2 = jnp.dot(h1, w2_ref[...], preferred_element_type=jnp.float32)
    h2 = jnp.maximum(h2 + b2_ref[...], 0.0).astype(jnp.bfloat16)

    out = jnp.dot(h2, w3_ref[...], preferred_element_type=jnp.float32)
    o_ref[...] = (out + b3_ref[...]).astype(o_ref.dtype)


def prepare_dm_encoder_params(params):
    """One-time prep: pad every feature dim to a multiple of 128 and cast
    weights to bf16 (biases stay f32).  Zero pad rows/cols keep the math exact.
    Do this at init/load time, NOT per forward call."""
    w1, b1, w2, b2, w3, b3 = params
    F, H0 = w1.shape
    H1 = w2.shape[1]
    H2 = w3.shape[1]
    Fp, H0p, H1p, H2p = (_round_up(d, 128) for d in (F, H0, H1, H2))
    bf16 = jnp.bfloat16
    return (
        _pad2d(w1, Fp, H0p).astype(bf16),
        _pad2d(b1, 1, H0p).astype(jnp.float32),
        _pad2d(w2, H0p, H1p).astype(bf16),
        _pad2d(b2, 1, H1p).astype(jnp.float32),
        _pad2d(w3, H1p, H2p).astype(bf16),
        _pad2d(b3, 1, H2p).astype(jnp.float32),
    )


@functools.partial(jax.jit, static_argnames=("out_features", "block_b"))
def dm_encoder_forward(x, prepared_params, *, out_features, block_b=2048):
    """x: (B, num_encoder_obs) f32.  prepared_params: from prepare_dm_encoder_params.
    Returns (B, out_features) f32."""
    w1p, b1p, w2p, b2p, w3p, b3p = prepared_params
    B, F = x.shape
    Fp, H0p = w1p.shape
    H1p = w2p.shape[1]
    H2p = w3p.shape[1]

    # ---- batch tiling ------------------------------------------------------
    block_b = int(block_b)
    if B <= block_b:
        if B >= 512:
            # Big enough to split into >=2 grid steps so both v7x TCs work.
            block_b = _round_up(pl.cdiv(B, 2), 16)
        else:
            block_b = B                      # full-extent block (always legal)
    else:
        block_b = max(16, (block_b // 16) * 16)   # keep (8,128)-rule alignment
    grid = (pl.cdiv(B, block_b),)

    # Weights/biases are tiny, constant index map -> fetched once, VMEM-resident.
    full = lambda shape: pl.BlockSpec(shape, lambda i: (0, 0))

    kernel = functools.partial(_dm_encoder_kernel, n_real_features=F)

    out_padded = pl.pallas_call(
        kernel,
        out_shape=jax.ShapeDtypeStruct((B, H2p), jnp.float32),
        grid_spec=pltpu.PrefetchScalarGridSpec(
            num_scalar_prefetch=0,
            grid=grid,
            in_specs=[
                pl.BlockSpec((block_b, F), lambda i: (i, 0)),   # raw f32 x tile
                full((Fp, H0p)), full((1, H0p)),                # layer 1
                full((H0p, H1p)), full((1, H1p)),               # layer 2
                full((H1p, H2p)), full((1, H2p)),               # layer 3
            ],
            out_specs=pl.BlockSpec((block_b, H2p), lambda i: (i, 0)),
            scratch_shapes=[pltpu.VMEM((block_b, Fp), jnp.float32)],
        ),
        compiler_params=pltpu.CompilerParams(
            dimension_semantics=("parallel",),
            vmem_limit_bytes=32 * 1024 * 1024),
    )(x, w1p, b1p, w2p, b2p, w3p, b3p)

    # TODO(synk): fold this slice (and, at the ~8-row deployment batch, the
    # whole encoder) into the downstream actor/critic kernel.
    return out_padded[:, :out_features]


def init_dm_encoder_params(key, num_encoder_obs, encoder_hidden_dims,
                           dtype=jnp.float32):
    """Deterministic init matching nn.Linear's U(-1/sqrt(fan_in), 1/sqrt(fan_in)).
    Weights are stored as (in_features, out_features)."""
    dims = [num_encoder_obs] + list(encoder_hidden_dims)
    params = []
    for li in range(3):
        fan_in, fan_out = dims[li], dims[li + 1]
        key, kw, kb = jax.random.split(key, 3)
        bound = 1.0 / jnp.sqrt(jnp.asarray(fan_in, dtype))
        w = jax.random.uniform(kw, (fan_in, fan_out), dtype,
                               minval=-bound, maxval=bound)
        b = jax.random.uniform(kb, (1, fan_out), dtype,
                               minval=-bound, maxval=bound)
        params.extend([w, b])
    return tuple(params)


def dm_encoder_reference(x, params):
    """Plain-JAX f32 reference for the same forward pass."""
    w1, b1, w2, b2, w3, b3 = params
    h = jnp.maximum(x @ w1 + b1, 0.0)
    h = jnp.maximum(h @ w2 + b2, 0.0)
    return h @ w3 + b3


if __name__ == "__main__":
    # RMA depth-map encoder config: (batch, 187) depth map, hidden [128, 64, 32].
    num_encoder_obs = 187
    encoder_hidden_dims = [128, 64, 32]
    batch = 64          # small demo batch; block_b=32 -> grid=(2,) exercises
                        # the multi-step pipeline / megacore-safe staging path.

    key = jax.random.PRNGKey(0)
    key, kx = jax.random.split(key)
    x = jax.random.normal(kx, (batch, num_encoder_obs), jnp.float32)

    params = init_dm_encoder_params(key, num_encoder_obs, encoder_hidden_dims)
    prepared = prepare_dm_encoder_params(params)       # one-time pad + bf16 cast

    out = dm_encoder_forward(x, prepared,
                             out_features=encoder_hidden_dims[-1], block_b=32)
    out = jax.block_until_ready(out)

    ref = dm_encoder_reference(x, params)
    assert out.shape == (batch, encoder_hidden_dims[-1]), out.shape
    # bf16 matmul inputs with f32 accumulation -> relaxed tolerance.
    assert jnp.allclose(out, ref, atol=5e-2, rtol=5e-2), "mismatch vs reference"

    print("KERNEL_OK")
</pallas_src>

<mosaic_0001>
module attributes {stable_mosaic.version = 11 : i64} {
  func.func @_dm_encoder_kernel(%arg0: i32, %arg1: memref<32x187xf32, #tpu.memory_space<vmem>>, %arg2: memref<256x128xbf16, #tpu.memory_space<vmem>>, %arg3: memref<1x128xf32, #tpu.memory_space<vmem>>, %arg4: memref<128x128xbf16, #tpu.memory_space<vmem>>, %arg5: memref<1x128xf32, #tpu.memory_space<vmem>>, %arg6: memref<128x128xbf16, #tpu.memory_space<vmem>>, %arg7: memref<1x128xf32, #tpu.memory_space<vmem>>, %arg8: memref<32x128xf32, #tpu.memory_space<vmem>>, %arg9: memref<32x256xf32, #tpu.memory_space<vmem>>) attributes {dimension_semantics = [#tpu.dimension_semantics<parallel>], iteration_bounds = array<i64: 2>, scalar_prefetch = 0 : i64, scratch_operands = 1 : i64, tpu.core_type = #tpu.core_type<tc>, window_params = [{transform_indices = @transform_0, window_bounds = array<i64: 32, 187>}, {pipeline_mode = #tpu.pipeline_mode<synchronous>, transform_indices = @transform_1, window_bounds = array<i64: 256, 128>}, {pipeline_mode = #tpu.pipeline_mode<synchronous>, transform_indices = @transform_2, window_bounds = array<i64: 1, 128>}, {pipeline_mode = #tpu.pipeline_mode<synchronous>, transform_indices = @transform_3, window_bounds = array<i64: 128, 128>}, {pipeline_mode = #tpu.pipeline_mode<synchronous>, transform_indices = @transform_4, window_bounds = array<i64: 1, 128>}, {pipeline_mode = #tpu.pipeline_mode<synchronous>, transform_indices = @transform_5, window_bounds = array<i64: 128, 128>}, {pipeline_mode = #tpu.pipeline_mode<synchronous>, transform_indices = @transform_6, window_bounds = array<i64: 1, 128>}, {transform_indices = @transform_7, window_bounds = array<i64: 32, 128>}]} {
    %c0 = arith.constant 0 : index
    %c0_0 = arith.constant 0 : index
    %0 = vector.load %arg1[%c0, %c0_0] : memref<32x187xf32, #tpu.memory_space<vmem>>, vector<32x187xf32>
    %c0_1 = arith.constant 0 : index
    %c0_2 = arith.constant 0 : index
    %1 = vector.load %arg9[%c0_1, %c0_2] : memref<32x256xf32, #tpu.memory_space<vmem>>, vector<32x187xf32>
    tpu.vector_store %arg9[%c0_1, %c0_2], %0 {strides = array<i32>} : memref<32x256xf32, #tpu.memory_space<vmem>>, vector<32x187xf32>,
    %cst = arith.constant 0.000000e+00 : f32
    %2 = vector.broadcast %cst : f32 to vector<32x69xf32>
    %c0_3 = arith.constant 0 : index
    %c187 = arith.constant 187 : index
    %3 = vector.load %arg9[%c0_3, %c187] : memref<32x256xf32, #tpu.memory_space<vmem>>, vector<32x69xf32>
    tpu.vector_store %arg9[%c0_3, %c187], %2 {strides = array<i32>} : memref<32x256xf32, #tpu.memory_space<vmem>>, vector<32x69xf32>,
    %c0_4 = arith.constant 0 : index
    %c0_5 = arith.constant 0 : index
    %4 = vector.load %arg9[%c0_4, %c0_5] : memref<32x256xf32, #tpu.memory_space<vmem>>, vector<32x256xf32>
    %5 = arith.truncf %4 : vector<32x256xf32> to vector<32x256xbf16>
    %c0_6 = arith.constant 0 : index
    %c0_7 = arith.constant 0 : index
    %6 = vector.load %arg2[%c0_6, %c0_7] : memref<256x128xbf16, #tpu.memory_space<vmem>>, vector<256x128xbf16>
    %cst_8 = arith.constant dense<0.000000e+00> : vector<32x128xf32>
    %7 = tpu.matmul %5, %6, %cst_8 {dimension_numbers = #tpu.dot_dimension_numbers<[1], [0], [0], [1], [0, 0, 1, 1], [], []>} : vector<32x256xbf16>, vector<256x128xbf16>, vector<32x128xf32> -> vector<32x128xf32>
    %c0_9 = arith.constant 0 : index
    %c0_10 = arith.constant 0 : index
    %8 = vector.load %arg3[%c0_9, %c0_10] : memref<1x128xf32, #tpu.memory_space<vmem>>, vector<1x128xf32>
    %9 = vector.broadcast %8 : vector<1x128xf32> to vector<32x128xf32>
    %10 = arith.addf %7, %9 : vector<32x128xf32>
    %cst_11 = arith.constant 0.000000e+00 : f32
    %11 = vector.broadcast %cst_11 : f32 to vector<32x128xf32>
    %12 = arith.maximumf %10, %11 : vector<32x128xf32>
    %13 = arith.truncf %12 : vector<32x128xf32> to vector<32x128xbf16>
    %c0_12 = arith.constant 0 : index
    %c0_13 = arith.constant 0 : index
    %14 = vector.load %arg4[%c0_12, %c0_13] : memref<128x128xbf16, #tpu.memory_space<vmem>>, vector<128x128xbf16>
    %cst_14 = arith.constant dense<0.000000e+00> : vector<32x128xf32>
    %15 = tpu.matmul %13, %14, %cst_14 {dimension_numbers = #tpu.dot_dimension_numbers<[1], [0], [0], [1], [0, 0, 1, 1], [], []>} : vector<32x128xbf16>, vector<128x128xbf16>, vector<32x128xf32> -> vector<32x128xf32>
    %c0_15 = arith.constant 0 : index
    %c0_16 = arith.constant 0 : index
    %16 = vector.load %arg5[%c0_15, %c0_16] : memref<1x128xf32, #tpu.memory_space<vmem>>, vector<1x128xf32>
    %17 = vector.broadcast %16 : vector<1x128xf32> to vector<32x128xf32>
    %18 = arith.addf %15, %17 : vector<32x128xf32>
    %cst_17 = arith.constant 0.000000e+00 : f32
    %19 = vector.broadcast %cst_17 : f32 to vector<32x128xf32>
    %20 = arith.maximumf %18, %19 : vector<32x128xf32>
    %21 = arith.truncf %20 : vector<32x128xf32> to vector<32x128xbf16>
    %c0_18 = arith.constant 0 : index
    %c0_19 = arith.constant 0 : index
    %22 = vector.load %arg6[%c0_18, %c0_19] : memref<128x128xbf16, #tpu.memory_space<vmem>>, vector<128x128xbf16>
    %cst_20 = arith.constant dense<0.000000e+00> : vector<32x128xf32>
    %23 = tpu.matmul %21, %22, %cst_20 {dimension_numbers = #tpu.dot_dimension_numbers<[1], [0], [0], [1], [0, 0, 1, 1], [], []>} : vector<32x128xbf16>, vector<128x128xbf16>, vector<32x128xf32> -> vector<32x128xf32>
    %c0_21 = arith.constant 0 : index
    %c0_22 = arith.constant 0 : index
    %24 = vector.load %arg7[%c0_21, %c0_22] : memref<1x128xf32, #tpu.memory_space<vmem>>, vector<1x128xf32>
    %25 = vector.broadcast %24 : vector<1x128xf32> to vector<32x128xf32>
    %26 = arith.addf %23, %25 : vector<32x128xf32>
    %c0_23 = arith.constant 0 : index
    %c0_24 = arith.constant 0 : index
    %27 = vector.load %arg8[%c0_23, %c0_24] : memref<32x128xf32, #tpu.memory_space<vmem>>, vector<32x128xf32>
    tpu.vector_store %arg8[%c0_23, %c0_24], %26 {strides = array<i32>} : memref<32x128xf32, #tpu.memory_space<vmem>>, vector<32x128xf32>,
    return
  }
  func.func @transform_0(%arg0: i32) -> (i32, i32) {
    %c0_i32 = arith.constant 0 : i32
    %c0_i32_0 = arith.constant 0 : i32
    return %arg0, %c0_i32 : i32, i32
  }
  func.func @transform_1(%arg0: i32) -> (i32, i32) {
    %c0_i32 = arith.constant 0 : i32
    %c0_i32_0 = arith.constant 0 : i32
    %c0_i32_1 = arith.constant 0 : i32
    return %c0_i32, %c0_i32_0 : i32, i32
  }
  func.func @transform_2(%arg0: i32) -> (i32, i32) {
    %c0_i32 = arith.constant 0 : i32
    %c0_i32_0 = arith.constant 0 : i32
    %c0_i32_1 = arith.constant 0 : i32
    return %c0_i32, %c0_i32_0 : i32, i32
  }
  func.func @transform_3(%arg0: i32) -> (i32, i32) {
    %c0_i32 = arith.constant 0 : i32
    %c0_i32_0 = arith.constant 0 : i32
    %c0_i32_1 = arith.constant 0 : i32
    return %c0_i32, %c0_i32_0 : i32, i32
  }
  func.func @transform_4(%arg0: i32) -> (i32, i32) {
    %c0_i32 = arith.constant 0 : i32
    %c0_i32_0 = arith.constant 0 : i32
    %c0_i32_1 = arith.constant 0 : i32
    return %c0_i32, %c0_i32_0 : i32, i32
  }
  func.func @transform_5(%arg0: i32) -> (i32, i32) {
    %c0_i32 = arith.constant 0 : i32
    %c0_i32_0 = arith.constant 0 : i32
    %c0_i32_1 = arith.constant 0 : i32
    return %c0_i32, %c0_i32_0 : i32, i32
  }
  func.func @transform_6(%arg0: i32) -> (i32, i32) {
    %c0_i32 = arith.constant 0 : i32
    %c0_i32_0 = arith.constant 0 : i32
    %c0_i32_1 = arith.constant 0 : i32
    return %c0_i32, %c0_i32_0 : i32, i32
  }
  func.func @transform_7(%arg0: i32) -> (i32, i32) {
    %c0_i32 = arith.constant 0 : i32
    %c0_i32_0 = arith.constant 0 : i32
    return %arg0, %c0_i32 : i32, i32
  }
}

</mosaic_0001>

<bundles_post_ra>
// kernel: dm_encoder_forward.1
= control target key start
LH: loop header
LB: loop body
LE: loop exit
PB: predicated region body
PF: predicated region fallthrough
CT: control target
= control target key end

     0   :  { %12 = vsyncpa [#allocation4], 0  ;;  %s1622_s0 = inlined_call_operand.hbm [shape: f32[64,187], index: 0, kind: input, shape index: {}]   ;;  %s1623_s1 = inlined_call_operand.hbm [shape: bf16[256,128], index: 1, kind: input, shape index: {}]   ;;  %s1624_s2 = inlined_call_operand.vmem [shape: f32[1,128], index: 2, kind: input, shape index: {}]   ;;  %s1625_s3 = inlined_call_operand.hbm [shape: bf16[128,128], index: 3, kind: input, shape index: {}]   ;;  %s1626_s4 = inlined_call_operand.vmem [shape: f32[1,128], index: 4, kind: input, shape index: {}]   ;;  %s1627_s5 = inlined_call_operand.hbm [shape: bf16[128,128], index: 5, kind: input, shape index: {}]   ;;  %s1628_s6 = inlined_call_operand.vmem [shape: f32[1,128], index: 6, kind: input, shape index: {}]   ;;  %s1629_s7 = inlined_call_operand.vmem [shape: f32[64,128], index: 7, kind: output, shape index: {}]  }
   0x1   :  { %14 = vsyncpa [#allocation4 + $0x1], 0 }
   0x2   :  { %15 = vsyncpa [#allocation6], 0 }
   0x3   :  { %16 = vsyncpa [#allocation9], 0  ;;  %s1376_s24 = smov 0   ;;  %s1378_s25 = smov 0  }
   0x4   :  { %s1380_s26 = smov 0   ;;  %s1382_s27 = smov 0  }
   0x5 LB: > { %s917_s28 = sadd.s32 4294967295, %s1325_s27   ;;  %p42_p0 = scmp.ne.s32.totalorder %s1317_s25, %s1313_s24  ;;  %s1325_s27 = sphi %s1382_s27, %s1646_s27   ;;  %s1321_s26 = sphi %s1380_s26, %s1645_s26   ;;  %s1317_s25 = sphi %s1378_s25, %s1644_s25   ;;  %s1313_s24 = sphi %s1376_s24, %s1643_s24  }
   0x6   : > { %p1398_p1 = scmp.eq.s32.totalorder %s917_s28, 0  ;;  %p919_p2 = scmp.ge.s32.totalorder %s1325_s27, 1 }
   0x7   : > { %p205_p3 = scmp.lt.s32.totalorder %s1325_s27, 3  ;;  %s1327_s9 = smov [#allocation5]  }
   0x8   : > { %s1634_s29 = scalar_select %p1398_p1, 1, 0 }
   0x9   : > { %p1406_p4 = por %p1398_p1, %p42_p0  ;;  %p1410_p5 = pnand %p919_p2, %p205_p3 }
   0xa   : > { %s217_s10 = sshll.u32 %s1327_s9, 4  ;;  %s1328_s12 = smov [#allocation7]   ;;  %s1414_s10 = int_to_ptr.vmem [resolvable:$true] %s217_s10 }
   0xb   : > { %s1635_s30 = scalar_select %p1406_p4, 1, 0 }
   0xc   : > { %s1636_s8 = scalar_select %p1410_p5, 1, 0 }
   0xd   : > { %p1076_p6 = pneg %p1410_p5  ;;  %s233_s13 = sshll.u32 %s1328_s12, 4  ;;  %s1424_s13 = int_to_ptr.vmem [resolvable:$true] %s233_s13 }
   0xe   : > { %s1329_s14 = smov [#allocation8]   ;;  %s1169_s18 = scalar_lea.hbm %s1623_s1, 2048 }
   0xf   : > { %p1420_p7 = pnand %p1076_p6, %p1398_p1  ;;  %s1426_s15 = sshll.u32 %s1329_s14, 4  ;;  %s250_s15 = int_to_ptr.vmem [resolvable:$true] %s1426_s15 }
  0x10   : > { %p1170_p8 = scmp.ne.s32.totalorder %s1623_s1, %s1169_s18  ;;  %p1176_p12 = scmp.lt.u32.totalorder %s1169_s18, %s1623_s1 }
  0x11   : > { %p1436_p9 = pneg %p1420_p7 }
  0x13   : > { %p1172_p10 = pnand %p1436_p9, %p1170_p8 }
  0x15   : > { %p1173_p11 = pneg %p1172_p10 }
  0x17   : > { %p1178_p13 = pnand %p1176_p12, %p1173_p11 }
  0x19   : > { %1181 = shalt.err (!%p1178_p13)
}
  0x1a   : > { %s1182_s24 = scalar_lea.vmem %s1414_s10, 2048  ;;  %p1190_p6 = scmp.lt.s32.totalorder %s1414_s10, %s1414_s10 }
  0x1b   : > { %p1183_p0 = scmp.ne.s32.totalorder %s1414_s10, %s1182_s24  ;;  %p1191_p1 = scmp.lt.s32.totalorder %s1182_s24, %s1182_s24 }
  0x1d   : > { %p1185_p2 = pnand %p1183_p0, %p1436_p9  ;;  %p1192_p8 = por %p1191_p1, %p1190_p6 }
  0x1f   : > { %p1186_p3 = pneg %p1185_p2 }
  0x21   : > { %p1193_p10 = pnand %p1192_p8, %p1186_p3 }
  0x23   : > { %1196 = shalt.err (!%p1193_p10)
}
  0x24   : > { %s1330_s9 = smov 64   ;;  %s1331_s12 = smov 4  }
  0x25   : > { %1079 = dma.hbm_to_vmem [thread:$0]  (!%p1420_p7), %s1623_s1, 2048, %s1414_s10, [#allocation6], %s1330_s9, %s1330_s9, %s1331_s12  }
  0x26   : > { %s1197_s19 = scalar_lea.hbm %s1625_s3, 1024 }
  0x27   : > { %p1198_p1 = scmp.ne.s32.totalorder %s1625_s3, %s1197_s19  ;;  %p1204_p13 = scmp.lt.u32.totalorder %s1197_s19, %s1625_s3 }
  0x29   : > { %p1200_p11 = pnand %p1198_p1, %p1436_p9 }
  0x2b   : > { %p1201_p12 = pneg %p1200_p11 }
  0x2d   : > { %p1206_p0 = pnand %p1204_p13, %p1201_p12 }
  0x2f   : > { %1209 = shalt.err (!%p1206_p0)
}
  0x30   : > { %s1210_s10 = scalar_lea.vmem %s1424_s13, 1024  ;;  %p1218_p8 = scmp.lt.s32.totalorder %s1424_s13, %s1424_s13 }
  0x31   : > { %p1211_p2 = scmp.ne.s32.totalorder %s1424_s13, %s1210_s10  ;;  %p1219_p10 = scmp.lt.s32.totalorder %s1210_s10, %s1210_s10 }
  0x33   : > { %p1213_p3 = pnand %p1211_p2, %p1436_p9  ;;  %p1220_p1 = por %p1219_p10, %p1218_p8 }
  0x35   : > { %p1214_p6 = pneg %p1213_p3 }
  0x37   : > { %p1221_p11 = pnand %p1220_p1, %p1214_p6 }
  0x39   : > { %1224 = shalt.err (!%p1221_p11)
}
  0x3a   : > { %1082 = dma.hbm_to_vmem [thread:$0]  (!%p1420_p7), %s1625_s3, 1024, %s1424_s13, [#allocation6], %s1330_s9, %s1330_s9, %s1331_s12  }
  0x3b   : > { %s1225_s19 = scalar_lea.hbm %s1627_s5, 1024 }
  0x3c   : > { %p1226_p12 = scmp.ne.s32.totalorder %s1627_s5, %s1225_s19  ;;  %p1232_p2 = scmp.lt.u32.totalorder %s1225_s19, %s1627_s5 }
  0x3e   : > { %p1228_p13 = pnand %p1226_p12, %p1436_p9 }
  0x40   : > { %p1229_p0 = pneg %p1228_p13 }
  0x42   : > { %p1234_p3 = pnand %p1232_p2, %p1229_p0 }
  0x44   : > { %1237 = shalt.err (!%p1234_p3)
}
  0x45   : > { %s1238_s10 = scalar_lea.vmem %s250_s15, 1024  ;;  %p1246_p1 = scmp.lt.s32.totalorder %s250_s15, %s250_s15 }
  0x46   : > { %p1239_p6 = scmp.ne.s32.totalorder %s250_s15, %s1238_s10  ;;  %p1247_p11 = scmp.lt.s32.totalorder %s1238_s10, %s1238_s10 }
  0x48   : > { %p1241_p8 = pnand %p1239_p6, %p1436_p9  ;;  %p1248_p4 = por %p1247_p11, %p1246_p1 }
  0x4a   : > { %p1242_p10 = pneg %p1241_p8 }
  0x4c   : > { %p1249_p5 = pnand %p1248_p4, %p1242_p10 }
  0x4e   : > { %1252 = shalt.err (!%p1249_p5)
}
  0x4f   : > { %1085 = dma.hbm_to_vmem [thread:$0]  (!%p1420_p7), %s1627_s5, 1024, %s250_s15, [#allocation9], %s1330_s9, %s1330_s9, %s1331_s12  }
  0x50   : > { %s1509_s21 = sadd.s32 1, %s1325_s27   ;;  %s29_s16 = sadd.s32 1, %s1321_s26 }
  0x51   : > { %s26_s11 = ssub.s32 %s1325_s27, %s1509_s21  ;;  %p36_p5 = scmp.ne.s32.totalorder %s1321_s26, %s1317_s25 }
  0x52   : > { %p27_p4 = scmp.eq.s32.totalorder %s26_s11, 0  ;;  %p37_p9 = scmp.eq.s32.totalorder %s1325_s27, 0 }
  0x53   : > { %p1093_p12 = scmp.lt.s32.totalorder %s1325_s27, 2  ;;  %s266_s18 = sand.u32 1, %s1321_s26  }
  0x54   : > { %s1519_s17 = scalar_select %p27_p4, %s1321_s26, %s29_s16  }
  0x55   : > { %p38_p13 = por %p37_p9, %p36_p5  ;;  %s924_s19 = sshll.u32 %s266_s18, 6 }
  0x56   : > { %s973_s20 = sshll.u32 %s1325_s27, 10  ;;  %s270_s15 = scalar_lea.vmem [#allocation3], %s924_s19 }
  0x57   : > { %s1526_s24 = scalar_lea.hbm %s1622_s0, %s973_s20  ;;  %s278_s9 = sshll.u32 %s270_s15, 4  ;;  %s1528_s9 = int_to_ptr.vmem [resolvable:$true] %s278_s9 }
  0x58   : > { %p1530_p7 = pnand %p1093_p12, %p38_p13  ;;  %s1534_s10 = scalar_lea.sflag [#allocation4], %s266_s18 }
  0x59   : > { %s1253_s13 = scalar_lea.hbm %s1526_s24, 1024  ;;  %s1258_s16 = scalar_lea.hbm %s1622_s0, 2048 }
  0x5a   : > { %p1254_p0 = scmp.ne.s32.totalorder %s1526_s24, %s1253_s13  ;;  %p1255_p2 = pneg %p1530_p7 }
  0x5b   : > { %p1259_p8 = scmp.lt.u32.totalorder %s1526_s24, %s1622_s0  ;;  %p1260_p10 = scmp.lt.u32.totalorder %s1258_s16, %s1253_s13 }
  0x5c   : > { %p1256_p3 = pnand %p1255_p2, %p1254_p0  ;;  %p1262_p11 = scmp.lt.u32.totalorder %s1253_s13, %s1526_s24 }
  0x5d   : > { %p1261_p1 = por %p1260_p10, %p1259_p8 }
  0x5e   : > { %p1257_p6 = pneg %p1256_p3 }
  0x5f   : > { %p1263_p4 = por %p1262_p11, %p1261_p1 }
  0x61   : > { %p1264_p5 = pnand %p1263_p4, %p1257_p6 }
  0x63   : > { %1267 = shalt.err (!%p1264_p5)
}
  0x64   : > { %s1268_s18 = scalar_lea.vmem %s1528_s9, 1024  ;;  %s1332_s22 = smov [#allocation3]  }
  0x65   : > { %p1269_p9 = scmp.ne.s32.totalorder %s1528_s9, %s1268_s18  ;;  %s1273_s23 = sshll.u32 %s1332_s22, 4  ;;  %s1274_s23 = int_to_ptr.vmem [resolvable:$false] %s1273_s23 }
  0x66   : > { %s1275_s15 = scalar_lea.vmem %s1274_s23, 2048  ;;  %p1276_p0 = scmp.lt.s32.totalorder %s1528_s9, %s1274_s23 }
  0x67   : > { %p1271_p12 = pnand %p1269_p9, %p1255_p2  ;;  %p1277_p3 = scmp.lt.s32.totalorder %s1275_s15, %s1268_s18 }
  0x69   : > { %p1272_p13 = pneg %p1271_p12  ;;  %p1278_p8 = por %p1277_p3, %p1276_p0 }
  0x6b   : > { %p1279_p10 = pnand %p1278_p8, %p1272_p13 }
  0x6d   : > { %1282 = shalt.err (!%p1279_p10)
}
  0x6e   : > { %s1333_s13 = smov 256   ;;  %s1334_s14 = smov 16  }
  0x6f   : > { %1089 = dma.hbm_to_vmem [thread:$0]  (!%p1530_p7), %s1526_s24, 1024, %s1528_s9, %s1534_s10, %s1333_s13, %s1333_s13, %s1334_s14  }
  0x70   : > { %p1640_p2 = scmp.ne.s32.totalorder %s1636_s8, 0 }
  0x71   : > { %s292_s11 = sand.u32 (!%p1640_p2), 1, %s1317_s25   ;;  %p1641_p6 = scmp.ne.s32.totalorder (!%p1640_p2), %s1635_s30, 0 }
  0x72   : > { %290 = sbr.rel (%p1640_p2) target bundleno = 831 (0x33f), region = 48  ;;  %s929_s16 = sshll.u32 (!%p1640_p2), %s292_s11, 6 }
  0x73   : > { %s293_s19 = scalar_lea.sflag (!%p1640_p2), [#allocation4], %s292_s11  ;;  %s1565_s20 = scalar_lea.vmem (!%p1640_p2), [#allocation3], %s929_s16 }
  0x79   : > { %1300 = dma.done.wait (%p1641_p6), %s293_s19, 1024  }
  0x7a   : > { %1302 = vsyncadd (%p1641_p6), %s293_s19, 4294966272  ;;  %p1642_p1 = scmp.ne.s32.totalorder %s1634_s29, 0 }
  0x7c   : > { %1304 = dma.done.wait (%p1642_p1), [#allocation6], 3072  }
  0x7d   : > { %1306 = vsyncadd (%p1642_p1), [#allocation6], 4294964224 }
  0x7e   : > { %1308 = dma.done.wait (%p1642_p1), [#allocation9], 1024  }
  0x7f   : > { %1310 = vsyncadd (%p1642_p1), [#allocation9], 4294966272  ;;  %v1137_v0 = vld [vmem:[#allocation5 + $0x40] sm:$0xff]   ;;  %v1139_v2 = vld [vmem:[#allocation5 + $0x48] sm:$0xff]   ;;  %vm356_vm0 = vcmask 482304   ;;  %vm364_vm1 = vcmask 1048024  }
  0x80   : > { %v1138_v1 = vld [vmem:[#allocation5] sm:$0xff]   ;;  %974 = vmatprep.subr.bf16.mxu0 %v1137_v0  ;;  %v1140_v3 = vld [vmem:[#allocation5 + $0x8] sm:$0xff]   ;;  %v1141_v4 = vld [vmem:[#allocation5 + $0x50] sm:$0xff]   ;;  %v1335_v19 = vmov 0.0   ;;  %s933_s9 = sshll.u32 %s917_s28, 2 }
  0x81   : > { %975 = vmatpush3.bf16.msra.mxu0 %v1138_v1  ;;  %v1142_v5 = vld [vmem:[#allocation5 + $0x10] sm:$0xff]   ;;  %v1143_v6 = vld [vmem:[#allocation5 + $0x58] sm:$0xff]   ;;  %v1145_v8 = vld [vmem:[#allocation5 + $0x60] sm:$0xff]   ;;  %p341_p7 = scmp.lt.s32.totalorder %s933_s9, 7 }
  0x82   : > { %976 = vmatprep.subr.bf16.mxu0 %v1139_v2  ;;  %v1144_v7 = vld [vmem:[#allocation5 + $0x18] sm:$0xff]   ;;  %v1146_v9 = vld [vmem:[#allocation5 + $0x20] sm:$0xff]   ;;  %v1147_v10 = vld [vmem:[#allocation5 + $0x68] sm:$0xff]  }
  0x83   : > { %v348_v11 = vld [vmem:[%s1565_s20 + $0x8] sm:$0xff]  ;;  %v350_v12 = vld [vmem:[%s1565_s20 + $0x18] sm:$0xff]  ;;  %v347_v13 = vld [vmem:[%s1565_s20] sm:$0xff]  ;;  %s1648_s9 = smov (!%p341_p7, %s933_s9), 7 }
  0x84   : > { %v1148_v14 = vld [vmem:[#allocation5 + $0x28] sm:$0xff]   ;;  %357 = vst.msk [vmem:[#allocation2 + $0x8] sm:$0xff] %vm356_vm0, %v348_v11  ;;  %359 = vst.msk [vmem:[#allocation2 + $0x18] sm:$0xff] %vm356_vm0, %v350_v12  ;;  %v349_v15 = vld [vmem:[%s1565_s20 + $0x10] sm:$0xff]  ;;  %s934_s12 = sshll.u32 %s1648_s9, 3 }
  0x85   : > { %977 = vmatpush3.bf16.msra.mxu0 %v1140_v3  ;;  %v352_v16 = vld [vmem:[%s1565_s20 + $0x28] sm:$0xff]  ;;  %v354_v17 = vld [vmem:[%s1565_s20 + $0x38] sm:$0xff]  ;;  %v1149_v18 = vld [vmem:[#allocation5 + $0x70] sm:$0xff]   ;;  %365 = vst.msk [vmem:[#allocation2 + $0x8] sm:$0xff] %vm364_vm1, %v1335_v19  ;;  %v377_v33 = vpack.c.bf16 %v349_v15, %v347_v13  ;;  %s344_s15 = scalar_lea.vmem %s1629_s7, %s934_s12 }
  0x86   : > { %978 = vmatprep.subr.bf16.mxu0 %v1141_v4  ;;  %366 = vst.msk [vmem:[#allocation2 + $0x18] sm:$0xff] %vm364_vm1, %v1335_v19  ;;  %v351_v20 = vld [vmem:[%s1565_s20 + $0x20] sm:$0xff]  ;;  %v353_v21 = vld [vmem:[%s1565_s20 + $0x30] sm:$0xff]  ;;  %v1154_v23 = vld [vmem:[#allocation7 + $0x8] sm:$0xff]  }
  0x87   : > { %361 = vst.msk [vmem:[#allocation2 + $0x28] sm:$0xff] %vm356_vm0, %v352_v16  ;;  %363 = vst.msk [vmem:[#allocation2 + $0x38] sm:$0xff] %vm356_vm0, %v354_v17  ;;  %v1153_v22 = vld [vmem:[#allocation7] sm:$0xff]   ;;  %v1150_v24 = vld [vmem:[#allocation5 + $0x30] sm:$0xff]   ;;  %v379_v35 = vpack.c.bf16 %v353_v21, %v351_v20 }
  0x88   : > { %367 = vst.msk [vmem:[#allocation2 + $0x28] sm:$0xff] %vm364_vm1, %v1335_v19  ;;  %368 = vst.msk [vmem:[#allocation2 + $0x38] sm:$0xff] %vm364_vm1, %v1335_v19  ;;  %1022 = vmatprep.subr.bf16.mxu1 %v1153_v22  ;;  %v1155_v25 = vld [vmem:[#allocation7 + $0x10] sm:$0xff]   ;;  %v1151_v26 = vld [vmem:[#allocation5 + $0x78] sm:$0xff]  }
  0x89   : > { %979 = vmatpush3.bf16.msra.mxu0 %v1142_v5  ;;  %1023 = vmatpush3.bf16.msra.mxu1 %v1153_v22  ;;  %v1152_v27 = vld [vmem:[#allocation5 + $0x38] sm:$0xff]   ;;  %v1157_v37 = vld [vmem:[#allocation7 + $0x20] sm:$0xff]   ;;  %v1158_v38 = vld [vmem:[#allocation7 + $0x28] sm:$0xff]  }
  0x8a   : > { %980 = vmatprep.subr.bf16.mxu0 %v1143_v6  ;;  %1024 = vmatprep.subr.bf16.mxu1 %v1154_v23  ;;  %v1156_v36 = vld [vmem:[#allocation7 + $0x18] sm:$0xff]   ;;  %v1159_v39 = vld [vmem:[#allocation7 + $0x30] sm:$0xff]   ;;  %v1161_v41 = vld [vmem:[#allocation8] sm:$0xff]  }
  0x8b   : > { %v1160_v40 = vld [vmem:[#allocation7 + $0x38] sm:$0xff]   ;;  %v1162_v42 = vld [vmem:[#allocation8 + $0x8] sm:$0xff]   ;;  %v1163_v43 = vld [vmem:[#allocation8 + $0x10] sm:$0xff]  }
  0x8c   : > { %v370_v28 = vld [vmem:[#allocation2 + $0x8] sm:$0xff]  ;;  %v1164_v44 = vld [vmem:[#allocation8 + $0x18] sm:$0xff]   ;;  %v1165_v45 = vld [vmem:[#allocation8 + $0x20] sm:$0xff]  }
  0x8d   : > { %981 = vmatpush3.bf16.msra.mxu0 %v1144_v7  ;;  %v372_v29 = vld [vmem:[#allocation2 + $0x18] sm:$0xff]  ;;  %1025 = vmatpush3.bf16.msra.mxu1 %v1154_v23  ;;  %v1166_v46 = vld [vmem:[#allocation8 + $0x28] sm:$0xff]   ;;  %v935_v49 = vld [vmem:[%s1624_s2] ss:$0 sm:$0xff] }
  0x8e   : > { %982 = vmatprep.subr.bf16.mxu0 %v1145_v8  ;;  %v378_v30 = vpack.c.bf16 %v372_v29, %v370_v28  ;;  %1026 = vmatprep.subr.bf16.mxu1 %v1155_v25  ;;  %v1167_v6 = vld [vmem:[#allocation8 + $0x30] sm:$0xff]   ;;  %v1168_v7 = vld [vmem:[#allocation8 + $0x38] sm:$0xff]   ;;  %v952_v8 = vld [vmem:[%s1626_s4] ss:$0 sm:$0xff] }
  0x8f   : > { %v374_v31 = vld [vmem:[#allocation2 + $0x28] sm:$0xff]  ;;  %v376_v32 = vld [vmem:[#allocation2 + $0x38] sm:$0xff]  ;;  %v961_v23 = vld [vmem:[%s1628_s6] ss:$0 sm:$0xff] }
  0x90   : > { %548 = vmatprep.mubr.bf16.mxu0 %v378_v30  ;;  %v380_v34 = vpack.c.bf16 %v376_v32, %v374_v31 }
  0x91   : > { %983 = vmatpush3.bf16.msra.mxu0 %v1146_v9  ;;  %1027 = vmatpush3.bf16.msra.mxu1 %v1155_v25 }
  0x92   : > { %984 = vmatprep.subr.bf16.mxu0 %v1147_v10  ;;  %1028 = vmatprep.subr.bf16.mxu1 %v1156_v36 }
  0x95   : > { %985 = vmatpush3.bf16.msra.mxu0 %v1148_v14  ;;  %1029 = vmatpush3.bf16.msra.mxu1 %v1156_v36 }
  0x96   : > { %986 = vmatprep.subr.bf16.mxu0 %v1149_v18  ;;  %1030 = vmatprep.subr.bf16.mxu1 %v1157_v37 }
  0x99   : > { %987 = vmatpush3.bf16.msra.mxu0 %v1150_v24  ;;  %1031 = vmatpush3.bf16.msra.mxu1 %v1157_v37 }
  0x9a   : > { %988 = vmatprep.subr.bf16.mxu0 %v1151_v26  ;;  %1032 = vmatprep.subr.bf16.mxu1 %v1158_v38 }
  0x9d   : > { %989 = vmatpush3.bf16.msra.mxu0 %v1152_v27  ;;  %1033 = vmatpush3.bf16.msra.mxu1 %v1158_v38 }
  0x9e   : > { %1034 = vmatprep.subr.bf16.mxu1 %v1159_v39  ;;  %1042 = vmatprep.subr.bf16.mxu0 %v1161_v41 }
  0xa0   : > { %549 = vmatmul.mubr.bf16.vlgmr.msra.gmra.mrb[0].mxu0 %v377_v33 }
  0xa1   : > { %556 = vmatprep.mubr.bf16.mxu0 %v380_v34  ;;  %1035 = vmatpush3.bf16.msra.mxu1 %v1159_v39 }
  0xa2   : > { %1036 = vmatprep.subr.bf16.mxu1 %v1160_v40  ;;  %1043 = vmatpush3.bf16.msra.mxu0 %v1161_v41 }
  0xa3   : > { %1044 = vmatprep.subr.bf16.mxu0 %v1162_v42 }
  0xa5   : > { %1037 = vmatpush3.bf16.msra.mxu1 %v1160_v40 }
  0xa6   : > { %1045 = vmatpush3.bf16.msra.mxu0 %v1162_v42 }
  0xa7   : > { %1046 = vmatprep.subr.bf16.mxu0 %v1163_v43 }
  0xa8   : > { %557 = vmatmul.mubr.bf16.gmra.mrb[4].mxu0 %v379_v35 }
  0xaa   : > { %1047 = vmatpush3.bf16.msra.mxu0 %v1163_v43 }
  0xab   : > { %1048 = vmatprep.subr.bf16.mxu0 %v1164_v44 }
  0xae   : > { %1049 = vmatpush3.bf16.msra.mxu0 %v1164_v44 }
  0xaf   : > { %1050 = vmatprep.subr.bf16.mxu0 %v1165_v45 }
  0xb2   : > { %1051 = vmatpush3.bf16.msra.mxu0 %v1165_v45 }
  0xb3   : > { %1052 = vmatprep.subr.bf16.mxu0 %v1166_v46 }
  0xb6   : > { %1053 = vmatpush3.bf16.msra.mxu0 %v1166_v46 }
  0xb7   : > { %1054 = vmatprep.subr.bf16.mxu0 %v1167_v6 }
  0xba   : > { %1055 = vmatpush3.bf16.msra.mxu0 %v1167_v6 }
  0xbb   : > { %1056 = vmatprep.subr.bf16.mxu0 %v1168_v7 }
  0xbe   : > { %1057 = vmatpush3.bf16.msra.mxu0 %v1168_v7 }
 0x173   : > { %v990_v47 = vpop.f32.mrb[0].mxu0 }
 0x174   : > { %v991_v48 = vpop.f32.mrb[1].mxu0 }
 0x175   : > { %v992_v50 = vadd.f32 %v991_v48, %v990_v47  ;;  %v993_v51 = vpop.f32.mrb[2].mxu0 }
 0x176   : > { %v994_v52 = vpop.f32.mrb[3].mxu0 }
 0x177   : > { %v995_v53 = vadd.f32 %v994_v52, %v993_v51  ;;  %v551_v54 = vadd.f32 %v992_v50, %v935_v49 }
 0x179   : > { %v554_v55 = vadd.f32 %v995_v53, %v935_v49  ;;  %v565_v57 = vmax.f32 %v551_v54, 0.0 }
 0x17b   : > { %v996_v56 = vpop.f32.mrb[4].mxu0  ;;  %v566_v58 = vmax.f32 %v554_v55, 0.0 }
 0x17c   : > { %v997_v59 = vpop.f32.mrb[5].mxu0 }
 0x17d   : > { %v998_v60 = vadd.f32 %v997_v59, %v996_v56  ;;  %v999_v61 = vpop.f32.mrb[6].mxu0  ;;  %v569_v62 = vpack.c.bf16 %v566_v58, %v565_v57 }
 0x17e   : > { %v1000_v63 = vpop.f32.mrb[7].mxu0 }
 0x17f   : > { %v559_v0 = vadd.f32 %v998_v60, %v935_v49  ;;  %v1001_v1 = vadd.f32 %v1000_v63, %v999_v61  ;;  %1038 = vmatprep.mubr.bf16.mxu1 %v569_v62 }
 0x181   : > { %v562_v2 = vadd.f32 %v1001_v1, %v935_v49  ;;  %v567_v3 = vmax.f32 %v559_v0, 0.0 }
 0x183   : > { %v568_v4 = vmax.f32 %v562_v2, 0.0 }
 0x185   : > { %v570_v5 = vpack.c.bf16 %v568_v4, %v567_v3 }
 0x187   : > { %1039 = vmatmul.mubr.bf16.vlgmr.msra.gmra.mrb[0].mxu1 %v570_v5 }
 0x25a   : > { %v1040_v9 = vpop.f32.mrb[0].mxu1 }
 0x25b   : > { %v685_v10 = vadd.f32 %v1040_v9, %v952_v8  ;;  %v676_v11 = vpop.f32.mrb[1].mxu1 }
 0x25c   : > { %v677_v12 = vadd.f32 %v952_v8, %v676_v11  ;;  %v1041_v13 = vpop.f32.mrb[2].mxu1 }
 0x25d   : > { %v688_v14 = vadd.f32 %v1041_v13, %v952_v8  ;;  %v679_v15 = vpop.f32.mrb[3].mxu1  ;;  %v693_v17 = vmax.f32 %v685_v10, 0.0 }
 0x25e   : > { %v680_v16 = vadd.f32 %v952_v8, %v679_v15  ;;  %v691_v19 = vmax.f32 %v677_v12, 0.0 }
 0x25f   : > { %v694_v18 = vmax.f32 %v688_v14, 0.0 }
 0x260   : > { %v692_v20 = vmax.f32 %v680_v16, 0.0 }
 0x261   : > { %v696_v21 = vpack.c.bf16 %v694_v18, %v693_v17 }
 0x262   : > { %v695_v22 = vpack.c.bf16 %v692_v20, %v691_v19 }
 0x264   : > { %1058 = vmatprep.mubr.bf16.mxu0 %v695_v22 }
 0x265   : > { %1059 = vmatmul.mubr.bf16.vlgmr.msra.gmra.mrb[8].mxu0 %v696_v21 }
 0x338   : > { %v1060_v24 = vpop.f32.mrb[8].mxu0 }
 0x339   : > { %v802_v25 = vpop.f32.mrb[9].mxu0  ;;  %v811_v30 = vadd.f32 %v1060_v24, %v961_v23 }
 0x33a   : > { %v803_v26 = vadd.f32 %v961_v23, %v802_v25  ;;  %v1061_v27 = vpop.f32.mrb[10].mxu0 }
 0x33b   : > { %v805_v28 = vpop.f32.mrb[11].mxu0  ;;  %v814_v31 = vadd.f32 %v1061_v27, %v961_v23  ;;  %819 = vst [vmem:[%s344_s15 + $0x10] sm:$0xff] %v811_v30 }
 0x33c   : > { %817 = vst [vmem:[%s344_s15] sm:$0xff] %v803_v26  ;;  %v806_v29 = vadd.f32 %v961_v23, %v805_v28 }
 0x33d   : > { %820 = vst [vmem:[%s344_s15 + $0x18] sm:$0xff] %v814_v31 }
 0x33e   : > { %818 = vst [vmem:[%s344_s15 + $0x8] sm:$0xff] %v806_v29 }
 0x33f PF: > { %p19_p11 = scmp.ge.s32.totalorder %s1509_s21, 4   ;;  %s1643_s24 = smov %s1317_s25 }
 0x340   : > { %s1644_s25 = smov %s1321_s26  ;;  %s1645_s26 = smov %s1519_s17 }
 0x341   : > { %s1646_s27 = smov %s1509_s21  ;;  %21 = sbr.rel (!%p19_p11) target bundleno = 5 (0x5), region = 100 }
 0x348   :  { %843 = vsyncpa [#allocation4], 1 }
 0x349   :  { %845 = vsyncpa [#allocation4 + $0x1], 1 }
 0x34a   :  { %846 = vsyncpa [#allocation6], 1 }
 0x34b   :  { %847 = vsyncpa [#allocation9], 1 }

</bundles_post_ra>
